<compile_context>
chip_gen: v7x
topology: tpu7x:2x2x1
jax: 0.10.0
libtpu: 0.0.40
codegen_flags: <defaults>
</compile_context>

<pallas_src>
import functools

import jax
import jax.numpy as jnp
from jax.experimental import pallas as pl
from jax.experimental.pallas import tpu as pltpu


def _round_up(a, m):
    return (a + m - 1) // m * m


def _masked_conv1d_kernel(x_ref, w_ref, b_ref, out_ref, *, n_taps, out_len):
    """x_ref:   (TB, Lp, C_in)        padded input, channels-last, compute dtype
       w_ref:   (n_taps, C_in, C_out) unmasked taps only, compute dtype
       b_ref:   (1, C_out)            float32
       out_ref: (TB, out_len, C_out)  float32
    """
    tb = out_ref.shape[0]
    c_in = x_ref.shape[2]
    c_out = out_ref.shape[2]

    m = tb * out_len
    acc = jnp.zeros((m, c_out), jnp.float32)
    for k in range(n_taps):                       # static unroll over taps
        # Tap-k window for all TB batches, flattened into one big-M MXU matmul.
        xk = x_ref[:, pl.ds(k, out_len), :].reshape(m, c_in)
        acc = acc + jnp.dot(xk, w_ref[k], preferred_element_type=jnp.float32)
    acc = acc + b_ref[...].astype(jnp.float32)    # broadcast (1, C_out)
    out_ref[...] = acc.reshape(tb, out_len, c_out).astype(out_ref.dtype)


def _pick_block_batch(batch, requested):
    if requested is not None:
        assert batch % requested == 0, "block_batch must divide batch"
        return requested
    # Largest divisor of `batch` that is <= 8 while keeping >= 2 grid steps
    # (so a v7x megacore can shard the parallel batch axis).
    cap = max(1, min(8, batch // 2)) if batch >= 2 else 1
    for tb in range(cap, 0, -1):
        if batch % tb == 0:
            return tb
    return 1


def masked_conv1d(x, weight, bias, mask_type, *, padding=None,
                  block_batch=None, compute_dtype=jnp.float32):
    """Masked causal Conv1d (PixelCNN MaskedConv1d forward).

    x:      (B, C_in, L) float32, PyTorch NCW layout
    weight: (C_out, C_in, K) PyTorch Conv1d weight
    bias:   (C_out,) or None
    mask_type: 'A' (center tap excluded) or 'B' (center tap included)
    Returns (B, C_out, L_out), L_out = L + 2*padding - K + 1 (padding=K//2 -> L).
    """
    assert mask_type in ('A', 'B')
    B, C_in, L = x.shape
    C_out, C_in_w, K = weight.shape
    assert C_in_w == C_in
    pad = K // 2 if padding is None else padding
    out_len = L + 2 * pad - K + 1
    n_taps = K // 2 + (1 if mask_type == 'B' else 0)

    if bias is None:
        bias = jnp.zeros((C_out,), jnp.float32)
    bias2d = bias.astype(jnp.float32).reshape(1, C_out)

    if n_taps == 0:
        # Fully-masked weight (K == 1, type 'A'): the conv output is just bias.
        return jnp.broadcast_to(bias.reshape(1, C_out, 1), (B, C_out, out_len))

    tb = _pick_block_batch(B, block_batch)

    # Host-side layout glue: channels-last, mask folded (only unmasked taps
    # kept), left zero-padding for the causal taps, and the per-batch time
    # extent rounded to the sublane tiling so the in-kernel (TB, L, C) ->
    # (TB*L, C) collapse is layout-trivial.
    itemsize = jnp.dtype(compute_dtype).itemsize
    sub = {4: 8, 2: 16, 1: 32}.get(itemsize, 8)
    lr = _round_up(out_len, sub)                        # rows computed per batch
    lp = _round_up(max(pad + L, lr + n_taps - 1), sub)  # padded input rows

    x_cl = jnp.transpose(x, (0, 2, 1))                  # (B, L, C_in)
    x_pad = jnp.pad(x_cl, ((0, 0), (pad, lp - pad - L), (0, 0)))
    x_pad = x_pad.astype(compute_dtype)

    # (C_out, C_in, K) -> keep unmasked taps only, as (n_taps, C_in, C_out).
    w_taps = jnp.transpose(weight[:, :, :n_taps], (2, 1, 0)).astype(compute_dtype)

    cost = pl.CostEstimate(
        flops=2 * B * out_len * C_in * C_out * n_taps,
        transcendentals=0,
        bytes_accessed=(B * lp * C_in * itemsize
                        + n_taps * C_in * C_out * itemsize
                        + C_out * 4
                        + B * lr * C_out * 4),
    )

    grid_spec = pltpu.PrefetchScalarGridSpec(
        num_scalar_prefetch=0,
        grid=(B // tb,),
        in_specs=[
            pl.BlockSpec((tb, lp, C_in), lambda g: (g, 0, 0)),         # x block
            pl.BlockSpec((n_taps, C_in, C_out), lambda g: (0, 0, 0)),  # weights
            pl.BlockSpec((1, C_out), lambda g: (0, 0)),                # bias
        ],
        out_specs=pl.BlockSpec((tb, lr, C_out), lambda g: (g, 0, 0)),
    )

    out = pl.pallas_call(
        functools.partial(_masked_conv1d_kernel, n_taps=n_taps, out_len=lr),
        out_shape=jax.ShapeDtypeStruct((B, lr, C_out), jnp.float32),
        grid_spec=grid_spec,
        compiler_params=pltpu.CompilerParams(
            dimension_semantics=("parallel",)),
        cost_estimate=cost,
    )(x_pad, w_taps, bias2d)

    # Drop the alignment rows and return PyTorch NCW layout.
    return jnp.transpose(out[:, :out_len, :], (0, 2, 1))


def reference_masked_conv1d(x, weight, bias, mask_type, padding=None):
    """Independent pure-JAX reference: mask the full weight (as the PyTorch
    module does) and run a standard conv."""
    C_out, C_in, K = weight.shape
    pad = K // 2 if padding is None else padding
    n_keep = K // 2 + (1 if mask_type == 'B' else 0)
    mask = (jnp.arange(K) < n_keep).astype(weight.dtype)
    w = weight * mask[None, None, :]
    y = jax.lax.conv_general_dilated(
        x, w, window_strides=(1,), padding=[(pad, pad)],
        dimension_numbers=('NCH', 'OIH', 'NCH'),
        precision=jax.lax.Precision.HIGHEST)
    if bias is not None:
        y = y + bias[None, :, None]
    return y


if __name__ == "__main__":
    key = jax.random.PRNGKey(0)
    kx, kw, kb = jax.random.split(key, 3)

    B, C_in, C_out, L, K = 4, 8, 16, 32, 5
    x = jax.random.normal(kx, (B, C_in, L), jnp.float32)
    weight = 0.1 * jax.random.normal(kw, (C_out, C_in, K), jnp.float32)
    bias = 0.1 * jax.random.normal(kb, (C_out,), jnp.float32)

    # f32 path, both mask types.
    for mask_type in ('A', 'B'):
        out = masked_conv1d(x, weight, bias, mask_type)
        out = jax.block_until_ready(out)
        ref = reference_masked_conv1d(x, weight, bias, mask_type)
        assert out.shape == ref.shape == (B, C_out, L)
        assert jnp.allclose(out, ref, atol=5e-4, rtol=5e-4), \
            f"mismatch vs reference (mask_type={mask_type})"

    # bf16 operand path (v6e/v7x MXU fast path), f32 accumulation.
    out_bf16 = masked_conv1d(x, weight, bias, 'B', compute_dtype=jnp.bfloat16)
    out_bf16 = jax.block_until_ready(out_bf16)
    ref_b = reference_masked_conv1d(x, weight, bias, 'B')
    assert jnp.allclose(out_bf16, ref_b, atol=5e-2, rtol=5e-2), \
        "bf16 path mismatch vs reference"

    print("KERNEL_OK")
</pallas_src>

<mosaic_0001>
module attributes {stable_mosaic.version = 11 : i64} {
  func.func @_masked_conv1d_kernel(%arg0: i32, %arg1: memref<2x40x8xf32, #tpu.memory_space<vmem>>, %arg2: memref<2x8x16xf32, #tpu.memory_space<vmem>>, %arg3: memref<1x16xf32, #tpu.memory_space<vmem>>, %arg4: memref<2x32x16xf32, #tpu.memory_space<vmem>>) attributes {dimension_semantics = [#tpu.dimension_semantics<parallel>], iteration_bounds = array<i64: 2>, scalar_prefetch = 0 : i64, scratch_operands = 0 : i64, tpu.core_type = #tpu.core_type<tc>, window_params = [{transform_indices = @transform_0, window_bounds = array<i64: 2, 40, 8>}, {pipeline_mode = #tpu.pipeline_mode<synchronous>, transform_indices = @transform_1, window_bounds = array<i64: 2, 8, 16>}, {pipeline_mode = #tpu.pipeline_mode<synchronous>, transform_indices = @transform_2, window_bounds = array<i64: 1, 16>}, {transform_indices = @transform_3, window_bounds = array<i64: 2, 32, 16>}]} {
    %cst = arith.constant 0.000000e+00 : f32
    %0 = vector.broadcast %cst : f32 to vector<64x16xf32>
    %c0 = arith.constant 0 : index
    %c0_0 = arith.constant 0 : index
    %c0_1 = arith.constant 0 : index
    %1 = vector.load %arg1[%c0, %c0_0, %c0_1] : memref<2x40x8xf32, #tpu.memory_space<vmem>>, vector<2x32x8xf32>
    %2 = vector.shape_cast %1 : vector<2x32x8xf32> to vector<64x8xf32>
    %c0_2 = arith.constant 0 : index
    %c0_3 = arith.constant 0 : index
    %c0_4 = arith.constant 0 : index
    %3 = vector.load %arg2[%c0_2, %c0_3, %c0_4] : memref<2x8x16xf32, #tpu.memory_space<vmem>>, vector<1x8x16xf32>
    %4 = vector.shape_cast %3 : vector<1x8x16xf32> to vector<8x16xf32>
    %cst_5 = arith.constant dense<0.000000e+00> : vector<64x16xf32>
    %5 = tpu.matmul %2, %4, %cst_5 {dimension_numbers = #tpu.dot_dimension_numbers<[1], [0], [0], [1], [0, 0, 1, 1], [], []>} : vector<64x8xf32>, vector<8x16xf32>, vector<64x16xf32> -> vector<64x16xf32>
    %6 = arith.addf %0, %5 : vector<64x16xf32>
    %c0_6 = arith.constant 0 : index
    %c1 = arith.constant 1 : index
    %c0_7 = arith.constant 0 : index
    %7 = vector.load %arg1[%c0_6, %c1, %c0_7] : memref<2x40x8xf32, #tpu.memory_space<vmem>>, vector<2x32x8xf32>
    %8 = vector.shape_cast %7 : vector<2x32x8xf32> to vector<64x8xf32>
    %c1_8 = arith.constant 1 : index
    %c0_9 = arith.constant 0 : index
    %c0_10 = arith.constant 0 : index
    %9 = vector.load %arg2[%c1_8, %c0_9, %c0_10] : memref<2x8x16xf32, #tpu.memory_space<vmem>>, vector<1x8x16xf32>
    %10 = vector.shape_cast %9 : vector<1x8x16xf32> to vector<8x16xf32>
    %cst_11 = arith.constant dense<0.000000e+00> : vector<64x16xf32>
    %11 = tpu.matmul %8, %10, %cst_11 {dimension_numbers = #tpu.dot_dimension_numbers<[1], [0], [0], [1], [0, 0, 1, 1], [], []>} : vector<64x8xf32>, vector<8x16xf32>, vector<64x16xf32> -> vector<64x16xf32>
    %12 = arith.addf %6, %11 : vector<64x16xf32>
    %c0_12 = arith.constant 0 : index
    %c0_13 = arith.constant 0 : index
    %13 = vector.load %arg3[%c0_12, %c0_13] : memref<1x16xf32, #tpu.memory_space<vmem>>, vector<1x16xf32>
    %14 = vector.broadcast %13 : vector<1x16xf32> to vector<64x16xf32>
    %15 = arith.addf %12, %14 : vector<64x16xf32>
    %16 = vector.shape_cast %15 : vector<64x16xf32> to vector<2x32x16xf32>
    %c0_14 = arith.constant 0 : index
    %c0_15 = arith.constant 0 : index
    %c0_16 = arith.constant 0 : index
    %17 = vector.load %arg4[%c0_14, %c0_15, %c0_16] : memref<2x32x16xf32, #tpu.memory_space<vmem>>, vector<2x32x16xf32>
    tpu.vector_store %arg4[%c0_14, %c0_15, %c0_16], %16 {strides = array<i32>} : memref<2x32x16xf32, #tpu.memory_space<vmem>>, vector<2x32x16xf32>,
    return
  }
  func.func @transform_0(%arg0: i32) -> (i32, i32, i32) {
    %c0_i32 = arith.constant 0 : i32
    %c0_i32_0 = arith.constant 0 : i32
    %c0_i32_1 = arith.constant 0 : i32
    return %arg0, %c0_i32, %c0_i32_0 : i32, i32, i32
  }
  func.func @transform_1(%arg0: i32) -> (i32, i32, i32) {
    %c0_i32 = arith.constant 0 : i32
    %c0_i32_0 = arith.constant 0 : i32
    %c0_i32_1 = arith.constant 0 : i32
    %c0_i32_2 = arith.constant 0 : i32
    return %c0_i32, %c0_i32_0, %c0_i32_1 : i32, i32, i32
  }
  func.func @transform_2(%arg0: i32) -> (i32, i32) {
    %c0_i32 = arith.constant 0 : i32
    %c0_i32_0 = arith.constant 0 : i32
    %c0_i32_1 = arith.constant 0 : i32
    return %c0_i32, %c0_i32_0 : i32, i32
  }
  func.func @transform_3(%arg0: i32) -> (i32, i32, i32) {
    %c0_i32 = arith.constant 0 : i32
    %c0_i32_0 = arith.constant 0 : i32
    %c0_i32_1 = arith.constant 0 : i32
    return %arg0, %c0_i32, %c0_i32_0 : i32, i32, i32
  }
}

</mosaic_0001>

<bundles_post_ra>
// kernel: tpu_custom_call.1
= control target key start
LH: loop header
LB: loop body
LE: loop exit
PB: predicated region body
PF: predicated region fallthrough
CT: control target
= control target key end

     0   :  { %s661_s12 = smov 0   ;;  %s725_s0 = inlined_call_operand.vmem [shape: f32[4,40,8], index: 0, kind: input, shape index: {}]   ;;  %s726_s1 = inlined_call_operand.vmem [shape: f32[2,8,16], index: 1, kind: input, shape index: {}]   ;;  %s727_s2 = inlined_call_operand.vmem [shape: f32[1,16], index: 2, kind: input, shape index: {}]   ;;  %s728_s3 = inlined_call_operand.vmem [shape: f32[4,32,16], index: 3, kind: output, shape index: {}]  }
   0x1 LB: > { %s539_s13 = sadd.s32 4294967295, %s639_s12   ;;  %p543_p0 = scmp.ge.s32.totalorder %s639_s12, 1  ;;  %s639_s12 = sphi %s661_s12, %s13_s12  }
   0x2   : > { %p139_p1 = scmp.lt.s32.totalorder %s639_s12, 3 }
   0x4   : > { %p140_p2 = pnand %p543_p0, %p139_p1 }
   0x5   : > { %v549_v0 = vld [vmem:[%s726_s1 + $0x8] sm:$0xff] (!%p140_p2)  ;;  %v187_v1 = vld [vmem:[%s726_s1] sm:$0xff] (!%p140_p2)  ;;  %s544_s18 = sshll.u32 (!%p140_p2), %s539_s13, 1  ;;  %vm198_vm0 = vcmask (!%p140_p2), 64512   ;;  %vm472_vm1 = vcmask (!%p140_p2), 130048  }
   0x6   : > { %143 = sbr.rel (%p140_p2) target bundleno = 250 (0xfa), region = 32  ;;  %588 = vmatprep.subr.mxu1 (!%p140_p2), %v549_v0  ;;  %602 = vmatprep.subr.mxu0 (!%p140_p2), %v187_v1  ;;  %p166_p3 = scmp.lt.s32.totalorder (!%p140_p2), %s544_s18, 3  ;;  %v566_v20 = vld [vmem:[%s727_s2] ss:$0 sm:$0xff] (!%p140_p2) }
   0x7   : > { %589 = vmatpush3.msra.mxu1 (!%p140_p2), %v549_v0  ;;  %603 = vmatpush3.msra.mxu0 (!%p140_p2), %v187_v1 }
   0xd   : > { %s730_s18 = smov (!%p166_p3, %s544_s18), 3 }
   0xe   : > { %s624_s19 = smul.u32 40, %s730_s18  ;;  %s569_s23 = sshll.u32 %s730_s18, 5 }
   0xf   : > { %s704_s28 = scalar_lea.vmem %s728_s3, %s569_s23 }
  0x10   : > { %s170_s22 = scalar_lea.vmem %s725_s0, %s624_s19 }
  0x11   : > { %v188_v2 = vld [vmem:[%s170_s22 + $0x1] sm:$0xff]  ;;  %v189_v4 = vld [vmem:[%s170_s22 + $0x9] sm:$0xff]  ;;  %v190_v6 = vld [vmem:[%s170_s22 + $0x11] sm:$0xff] }
  0x12   : > { %v179_v3 = vld [vmem:[%s170_s22] sm:$0xff]  ;;  %590 = vmatprep.mubr.msk.f32.mxu1 %vm198_vm0, %v188_v2  ;;  %v180_v5 = vld [vmem:[%s170_s22 + $0x8] sm:$0xff]  ;;  %v181_v7 = vld [vmem:[%s170_s22 + $0x10] sm:$0xff] }
  0x13   : > { %604 = vmatprep.mubr.msk.f32.mxu0 %vm198_vm0, %v179_v3  ;;  %591 = vmatmul.mubr.msk.f32.vlgmr.msra.gmra.mrb[0].mxu1 %vm198_vm0, %v189_v4  ;;  %v191_v8 = vld [vmem:[%s170_s22 + $0x19] sm:$0xff]  ;;  %v192_v10 = vld [vmem:[%s170_s22 + $0x29] sm:$0xff]  ;;  %v193_v12 = vld [vmem:[%s170_s22 + $0x31] sm:$0xff] }
  0x14   : > { %605 = vmatmul.mubr.msk.f32.vlgmr.msra.gmra.mrb[0].mxu0 %vm198_vm0, %v180_v5  ;;  %593 = vmatprep.mubr.msk.f32.mxu1 %vm198_vm0, %v190_v6  ;;  %v182_v9 = vld [vmem:[%s170_s22 + $0x18] sm:$0xff]  ;;  %v183_v11 = vld [vmem:[%s170_s22 + $0x28] sm:$0xff]  ;;  %v184_v13 = vld [vmem:[%s170_s22 + $0x30] sm:$0xff] }
  0x15   : > { %607 = vmatprep.mubr.msk.f32.mxu0 %vm198_vm0, %v181_v7  ;;  %v194_v14 = vld [vmem:[%s170_s22 + $0x39] sm:$0xff]  ;;  %v195_v16 = vld [vmem:[%s170_s22 + $0x41] sm:$0xff] }
  0x16   : > { %v185_v15 = vld [vmem:[%s170_s22 + $0x38] sm:$0xff]  ;;  %v186_v17 = vld [vmem:[%s170_s22 + $0x40] sm:$0xff] }
  0x17   : > { %594 = vmatmul.mubr.msk.f32.gmra.mrb[2].mxu1 %vm198_vm0, %v191_v8 }
  0x18   : > { %608 = vmatmul.mubr.msk.f32.gmra.mrb[2].mxu0 %vm198_vm0, %v182_v9  ;;  %596 = vmatprep.mubr.msk.f32.mxu1 %vm198_vm0, %v192_v10 }
  0x19   : > { %610 = vmatprep.mubr.msk.f32.mxu0 %vm198_vm0, %v183_v11 }
  0x1b   : > { %597 = vmatmul.mubr.msk.f32.gmra.mrb[4].mxu1 %vm198_vm0, %v193_v12 }
  0x1c   : > { %611 = vmatmul.mubr.msk.f32.gmra.mrb[4].mxu0 %vm198_vm0, %v184_v13  ;;  %599 = vmatprep.mubr.msk.f32.mxu1 %vm198_vm0, %v194_v14 }
  0x1d   : > { %613 = vmatprep.mubr.msk.f32.mxu0 %vm198_vm0, %v185_v15 }
  0x1f   : > { %600 = vmatmul.mubr.msk.f32.gmra.mrb[6].mxu1 %vm198_vm0, %v195_v16 }
  0x20   : > { %614 = vmatmul.mubr.msk.f32.gmra.mrb[6].mxu0 %vm198_vm0, %v186_v17 }
  0xe6   : > { %v592_v18 = vpop.f32.mrb[0].mxu1 }
  0xe7   : > { %v606_v19 = vpop.f32.mrb[0].mxu0  ;;  %v289_v22 = vpop.f32.mrb[1].mxu1 }
  0xe8   : > { %v424_v21 = vadd.f32 %v606_v19, %v592_v18  ;;  %v418_v23 = vpop.f32.mrb[1].mxu0 }
  0xe9   : > { %v419_v24 = vadd.f32 %v418_v23, %v289_v22 }
  0xea   : > { %v465_v25 = vadd.f32 %v566_v20, %v424_v21  ;;  %v595_v27 = vpop.f32.mrb[2].mxu1 }
  0xeb   : > { %v464_v26 = vadd.f32 %v566_v20, %v419_v24  ;;  %v609_v28 = vpop.f32.mrb[2].mxu0  ;;  %v299_v30 = vpop.f32.mrb[3].mxu1 }
  0xec   : > { %474 = vst.msk [vmem:[%s704_s28 + $0x8] sm:$0xff] %vm472_vm1, %v465_v25  ;;  %v434_v29 = vadd.f32 %v609_v28, %v595_v27  ;;  %v428_v31 = vpop.f32.mrb[3].mxu0 }
  0xed   : > { %473 = vst.msk [vmem:[%s704_s28] sm:$0xff] %vm472_vm1, %v464_v26  ;;  %v429_v32 = vadd.f32 %v428_v31, %v299_v30 }
  0xee   : > { %v467_v33 = vadd.f32 %v566_v20, %v434_v29  ;;  %v598_v35 = vpop.f32.mrb[4].mxu1 }
  0xef   : > { %v466_v34 = vadd.f32 %v566_v20, %v429_v32  ;;  %v612_v36 = vpop.f32.mrb[4].mxu0  ;;  %v309_v38 = vpop.f32.mrb[5].mxu1 }
  0xf0   : > { %476 = vst.msk [vmem:[%s704_s28 + $0x18] sm:$0xff] %vm472_vm1, %v467_v33  ;;  %v444_v37 = vadd.f32 %v612_v36, %v598_v35  ;;  %v438_v39 = vpop.f32.mrb[5].mxu0 }
  0xf1   : > { %475 = vst.msk [vmem:[%s704_s28 + $0x10] sm:$0xff] %vm472_vm1, %v466_v34  ;;  %v439_v40 = vadd.f32 %v438_v39, %v309_v38 }
  0xf2   : > { %v469_v41 = vadd.f32 %v566_v20, %v444_v37  ;;  %v601_v43 = vpop.f32.mrb[6].mxu1 }
  0xf3   : > { %v468_v42 = vadd.f32 %v566_v20, %v439_v40  ;;  %v615_v44 = vpop.f32.mrb[6].mxu0  ;;  %v319_v46 = vpop.f32.mrb[7].mxu1 }
  0xf4   : > { %478 = vst.msk [vmem:[%s704_s28 + $0x28] sm:$0xff] %vm472_vm1, %v469_v41  ;;  %v454_v45 = vadd.f32 %v615_v44, %v601_v43  ;;  %v448_v47 = vpop.f32.mrb[7].mxu0 }
  0xf5   : > { %477 = vst.msk [vmem:[%s704_s28 + $0x20] sm:$0xff] %vm472_vm1, %v468_v42  ;;  %v449_v48 = vadd.f32 %v448_v47, %v319_v46 }
  0xf6   : > { %v471_v49 = vadd.f32 %v566_v20, %v454_v45 }
  0xf7   : > { %v470_v50 = vadd.f32 %v566_v20, %v449_v48 }
  0xf8   : > { %480 = vst.msk [vmem:[%s704_s28 + $0x38] sm:$0xff] %vm472_vm1, %v471_v49 }
  0xf9   : > { %479 = vst.msk [vmem:[%s704_s28 + $0x30] sm:$0xff] %vm472_vm1, %v470_v50 }
  0xfa PF: > { %s13_s12 = sadd.s32 1, %s639_s12  }
  0xfb   : > { %p10_p4 = scmp.ge.s32.totalorder %s13_s12, 4  }
  0xfd   :  { %12 = sbr.rel (!%p10_p4) target bundleno = 1 (0x1), region = 63 }

</bundles_post_ra>
